<compile_context>
chip_gen: v7x
topology: tpu7x:2x2x1
jax: 0.10.0
libtpu: 0.0.40
codegen_flags: <defaults>
</compile_context>

<pallas_src>
import functools

import jax
import jax.numpy as jnp
from jax import lax
from jax.experimental import pallas as pl
from jax.experimental.pallas import tpu as pltpu

LN_EPS = 1e-5  # PyTorch nn.LayerNorm default


def _round_up(x, m):
    return ((x + m - 1) // m) * m


# -----------------------------------------------------------------------------
# Kernel
# -----------------------------------------------------------------------------
def mh_kernel(x_ref, w0_ref, pk_ref, w1_ref, o_ref, *, h0_real):
    """Fused forward for one batch tile.

    layer 0: Linear(ft_in -> H0) -> LayerNorm(H0) -> ReLU
    layer 1: Linear(H0 -> H1)            (last layer: no norm / act)

    H0 is lane-padded to H0p (multiple of 128); padded columns carry zero
    weights / bias / gamma / beta so they stay exactly 0 through the whole
    pipeline and do not contribute to layer 1.

    NOTE: on a partial last batch tile the padding rows hold undefined data;
    all math here is row-local and those rows are clipped on writeback, so any
    transient garbage/Inf in them is harmless.  Do not add cross-row reductions
    without masking.
    """
    mdt = w0_ref.dtype
    h0p = w0_ref.shape[1]
    h1 = o_ref.shape[1]

    # ---- layer 0 linear (activations cast to matmul dtype on the VPU) ----
    h = jnp.dot(x_ref[...].astype(mdt), w0_ref[...],
                preferred_element_type=jnp.float32)          # (TB, H0p) f32

    b0 = pk_ref[0:1, :h0p]
    g0 = pk_ref[1:2, :h0p]
    be0 = pk_ref[2:3, :h0p]
    b1 = pk_ref[3:4, :h1]

    h = h + b0                                   # padded cols stay exactly 0

    # ---- LayerNorm over the real H0 columns (f32 statistics) ----
    # Padded columns are 0, so plain sums give the real-column statistics and
    # no iota/where mask is needed (sum-of-squares variance form).
    inv_n = 1.0 / float(h0_real)
    mean = jnp.sum(h, axis=-1, keepdims=True) * inv_n
    msq = jnp.sum(h * h, axis=-1, keepdims=True) * inv_n
    var = msq - mean * mean
    hn = (h - mean) * lax.rsqrt(var + LN_EPS)
    hn = hn * g0 + be0                           # pad cols: gamma=beta=0 -> 0

    # ---- ReLU (dropout == identity at eval) ----
    hn = jnp.maximum(hn, 0.0)

    # ---- layer 1 linear (final: no norm / act), written unpadded ----
    y = jnp.dot(hn.astype(mdt), w1_ref[...],
                preferred_element_type=jnp.float32) + b1
    o_ref[...] = y.astype(o_ref.dtype)


# -----------------------------------------------------------------------------
# Parameter packing (done once, outside the hot path)
# -----------------------------------------------------------------------------
def pack_params(raw, matmul_dtype=jnp.bfloat16):
    """Pad H0 up to a multiple of 128 (lane-dense hidden / aligned K for layer 1)
    and pack b0 / gamma0 / beta0 / b1 into one (4, Wmax) f32 operand.  The final
    output dim H1 is left unpadded so the kernel writes exactly (B, H1)."""
    w0, b0, g0, be0, w1, b1 = (raw["w0"], raw["b0"], raw["gamma0"],
                               raw["beta0"], raw["w1"], raw["b1"])
    ft_in, h0 = w0.shape
    h1 = w1.shape[1]
    h0p = _round_up(h0, 128)
    wmax = max(h0p, h1)

    w0p = jnp.pad(w0, ((0, 0), (0, h0p - h0)))
    w1p = jnp.pad(w1, ((0, h0p - h0), (0, 0)))

    pk = jnp.zeros((4, wmax), jnp.float32)
    pk = pk.at[0, :h0].set(b0.reshape(-1))
    pk = pk.at[1, :h0].set(g0.reshape(-1))
    pk = pk.at[2, :h0].set(be0.reshape(-1))
    pk = pk.at[3, :h1].set(b1.reshape(-1))

    return {
        "w0": w0p.astype(matmul_dtype),
        "w1": w1p.astype(matmul_dtype),
        "pk": pk,
        "dims": (ft_in, h0, h0p, h1),
        "matmul_dtype": matmul_dtype,
    }


def _pick_tb(batch, batch_block=512):
    """Batch-tile size: >=2 grid steps when B permits (keeps both v7x TCs busy
    and overlaps activation DMA with compute); large tiles rounded to 256 rows
    for the 2x256x256 MXU; small tiles sublane(8)-aligned."""
    if batch <= 8:
        return batch
    tb = min(batch_block, (batch + 1) // 2)
    if tb >= 256:
        tb = (tb // 256) * 256
    else:
        tb = max((tb // 8) * 8, 8)
    return tb


# -----------------------------------------------------------------------------
# Forward wrapper
# -----------------------------------------------------------------------------
def mh_forward(cls_albef, cls_dot, packed, *, batch_block=512):
    """cls_albef: (B, F1), cls_dot: (B, F2).  Returns (B, H1) f32."""
    ft_in, h0, h0p, h1 = packed["dims"]
    mdt = packed["matmul_dtype"]
    B, f1 = cls_albef.shape
    _, f2 = cls_dot.shape
    assert f1 + f2 == ft_in

    # torch.cat fused into a single layer-0 matmul: the wrapper concat copies
    # only B*(F1+F2) f32 elements (negligible at these feature widths); the
    # kernel then sees ONE input stream and does ONE MXU pass for layer 0.
    # Activations stay f32 here -- the bf16 cast happens inside the kernel.
    x = jnp.concatenate([cls_albef, cls_dot], axis=1).astype(jnp.float32)

    tb = _pick_tb(B, batch_block)
    grid = (pl.cdiv(B, tb),)

    isz = jnp.dtype(mdt).itemsize
    w_bytes = (ft_in * h0p + h0p * h1) * isz + 4 * max(h0p, h1) * 4
    flops = 2 * B * (ft_in * h0p + h0p * h1)
    bytes_accessed = B * ft_in * 4 + w_bytes + B * h1 * 4

    # VMEM budget: double-buffered activation/output tiles + (possibly
    # double-buffered) resident weights + f32 intermediates.  Clamp to
    # <= 40 MiB so there is headroom on v7x (64 MiB physical per TC).
    est = (2 * (tb * ft_in * 4 + tb * h1 * 4) + 2 * w_bytes
           + 3 * tb * h0p * 4)
    vmem_limit = int(min(max(2 * est, 32 * 2**20), 40 * 2**20))

    kern = functools.partial(mh_kernel, h0_real=h0)

    out = pl.pallas_call(
        kern,
        out_shape=jax.ShapeDtypeStruct((B, h1), jnp.float32),
        grid=grid,
        in_specs=[
            pl.BlockSpec((tb, ft_in), lambda i: (i, 0)),           # x tile
            pl.BlockSpec(packed["w0"].shape, lambda i: (0, 0)),    # VMEM-resident
            pl.BlockSpec(packed["pk"].shape, lambda i: (0, 0)),
            pl.BlockSpec(packed["w1"].shape, lambda i: (0, 0)),
        ],
        out_specs=pl.BlockSpec((tb, h1), lambda i: (i, 0)),        # unpadded H1
        compiler_params=pltpu.CompilerParams(
            dimension_semantics=("parallel",),   # megacore sharding on v7x
            vmem_limit_bytes=vmem_limit),
        cost_estimate=pl.CostEstimate(
            flops=flops, transcendentals=B, bytes_accessed=bytes_accessed),
    )(x, packed["w0"], packed["pk"], packed["w1"])

    return out


# -----------------------------------------------------------------------------
# Init (matches SeqLinear.__init__: kaiming_normal_ weights, torch-default
# uniform bias, LayerNorm gamma=1 / beta=0) and plain-JAX reference.
# -----------------------------------------------------------------------------
def init_params(key, ft_in, ft_out):
    assert len(ft_out) == 2, "this script instantiates ft_out=[H0, H1]"
    h0, h1 = ft_out
    k0w, k0b, k1w, k1b = jax.random.split(key, 4)

    def kaiming(k, fan_in, fan_out):
        std = (2.0 / fan_in) ** 0.5
        return std * jax.random.normal(k, (fan_in, fan_out), dtype=jnp.float32)

    def bias(k, fan_in, fan_out):
        bound = 1.0 / (fan_in ** 0.5)
        return jax.random.uniform(k, (fan_out,), dtype=jnp.float32,
                                  minval=-bound, maxval=bound)

    return {
        "w0": kaiming(k0w, ft_in, h0),
        "b0": bias(k0b, ft_in, h0),
        "gamma0": jnp.ones((h0,), jnp.float32),
        "beta0": jnp.zeros((h0,), jnp.float32),
        "w1": kaiming(k1w, h0, h1),
        "b1": bias(k1b, h0, h1),
    }


def reference_forward(cls_albef, cls_dot, p):
    x = jnp.concatenate([cls_albef, cls_dot], axis=1)
    h = x @ p["w0"] + p["b0"]
    mean = h.mean(-1, keepdims=True)
    var = ((h - mean) ** 2).mean(-1, keepdims=True)
    h = (h - mean) / jnp.sqrt(var + LN_EPS) * p["gamma0"] + p["beta0"]
    h = jnp.maximum(h, 0.0)
    return h @ p["w1"] + p["b1"]


# TODO(synk): nn.Dropout(p=0.5) is treated as identity (eval mode); training-time
# stochastic dropout is not implemented in the kernel.

if __name__ == "__main__":
    key = jax.random.PRNGKey(0)
    k_albef, k_dot, k_param = jax.random.split(key, 3)

    # NOTE: at these demo shapes a single pallas_call is pure launch/DMA
    # overhead; real deployments should batch many rows per call.
    B, F1, F2 = 8, 16, 16          # ft_in = 32
    FT_OUT = [64, 32]              # SeqLinear(ft_in=32, ft_out=[64, 32])

    cls_albef = jax.random.normal(k_albef, (B, F1), dtype=jnp.float32)
    cls_dot = jax.random.normal(k_dot, (B, F2), dtype=jnp.float32)
    raw = init_params(k_param, F1 + F2, FT_OUT)

    ref = reference_forward(cls_albef, cls_dot, raw)

    # Default path: bf16 matmul operands (MXU-native on v5e/v6e/v7x),
    # f32 accumulation + f32 LayerNorm statistics.
    packed_bf16 = pack_params(raw, matmul_dtype=jnp.bfloat16)
    out_bf16 = jax.block_until_ready(mh_forward(cls_albef, cls_dot, packed_bf16))
    assert out_bf16.shape == (B, FT_OUT[-1])
    assert jnp.allclose(out_bf16, ref, atol=5e-2, rtol=5e-2)

    # Strict-accuracy f32 operand path (tolerance slightly looser than 1e-4
    # because the kernel uses the sum-of-squares variance form).
    packed_f32 = pack_params(raw, matmul_dtype=jnp.float32)
    out_f32 = jax.block_until_ready(mh_forward(cls_albef, cls_dot, packed_f32))
    assert out_f32.shape == (B, FT_OUT[-1])
    assert jnp.allclose(out_f32, ref, atol=5e-4, rtol=5e-4)

    print("KERNEL_OK")
</pallas_src>

<mosaic_0001>
module attributes {stable_mosaic.version = 11 : i64} {
  func.func @mh_kernel(%arg0: i32, %arg1: memref<8x32xf32, #tpu.memory_space<vmem>>, %arg2: memref<32x128xbf16, #tpu.memory_space<vmem>>, %arg3: memref<4x128xf32, #tpu.memory_space<vmem>>, %arg4: memref<128x32xbf16, #tpu.memory_space<vmem>>, %arg5: memref<8x32xf32, #tpu.memory_space<vmem>>) attributes {dimension_semantics = [#tpu.dimension_semantics<parallel>], iteration_bounds = array<i64: 1>, scalar_prefetch = 0 : i64, scratch_operands = 0 : i64, tpu.core_type = #tpu.core_type<tc>, window_params = [{transform_indices = @transform_0, window_bounds = array<i64: 8, 32>}, {pipeline_mode = #tpu.pipeline_mode<synchronous>, transform_indices = @transform_1, window_bounds = array<i64: 32, 128>}, {pipeline_mode = #tpu.pipeline_mode<synchronous>, transform_indices = @transform_2, window_bounds = array<i64: 4, 128>}, {pipeline_mode = #tpu.pipeline_mode<synchronous>, transform_indices = @transform_3, window_bounds = array<i64: 128, 32>}, {transform_indices = @transform_4, window_bounds = array<i64: 8, 32>}]} {
    %c0 = arith.constant 0 : index
    %c0_0 = arith.constant 0 : index
    %0 = vector.load %arg1[%c0, %c0_0] : memref<8x32xf32, #tpu.memory_space<vmem>>, vector<8x32xf32>
    %1 = arith.truncf %0 : vector<8x32xf32> to vector<8x32xbf16>
    %c0_1 = arith.constant 0 : index
    %c0_2 = arith.constant 0 : index
    %2 = vector.load %arg2[%c0_1, %c0_2] : memref<32x128xbf16, #tpu.memory_space<vmem>>, vector<32x128xbf16>
    %cst = arith.constant dense<0.000000e+00> : vector<8x128xf32>
    %3 = tpu.matmul %1, %2, %cst {dimension_numbers = #tpu.dot_dimension_numbers<[1], [0], [0], [1], [0, 0, 1, 1], [], []>} : vector<8x32xbf16>, vector<32x128xbf16>, vector<8x128xf32> -> vector<8x128xf32>
    %c0_3 = arith.constant 0 : index
    %c0_4 = arith.constant 0 : index
    %4 = vector.load %arg3[%c0_3, %c0_4] : memref<4x128xf32, #tpu.memory_space<vmem>>, vector<1x128xf32>
    %c1 = arith.constant 1 : index
    %c0_5 = arith.constant 0 : index
    %5 = vector.load %arg3[%c1, %c0_5] : memref<4x128xf32, #tpu.memory_space<vmem>>, vector<1x128xf32>
    %c2 = arith.constant 2 : index
    %c0_6 = arith.constant 0 : index
    %6 = vector.load %arg3[%c2, %c0_6] : memref<4x128xf32, #tpu.memory_space<vmem>>, vector<1x128xf32>
    %c3 = arith.constant 3 : index
    %c0_7 = arith.constant 0 : index
    %7 = vector.load %arg3[%c3, %c0_7] : memref<4x128xf32, #tpu.memory_space<vmem>>, vector<1x32xf32>
    %8 = vector.broadcast %4 : vector<1x128xf32> to vector<8x128xf32>
    %9 = arith.addf %3, %8 : vector<8x128xf32>
    %cst_8 = arith.constant dense<0.000000e+00> : vector<8xf32>
    %10 = vector.multi_reduction <add>, %9, %cst_8 [1] : vector<8x128xf32> to vector<8xf32>
    %11 = vector.shape_cast %10 : vector<8xf32> to vector<8x1xf32>
    %cst_9 = arith.constant 1.562500e-02 : f32
    %12 = vector.broadcast %cst_9 : f32 to vector<8x1xf32>
    %13 = arith.mulf %11, %12 : vector<8x1xf32>
    %14 = arith.mulf %9, %9 : vector<8x128xf32>
    %cst_10 = arith.constant dense<0.000000e+00> : vector<8xf32>
    %15 = vector.multi_reduction <add>, %14, %cst_10 [1] : vector<8x128xf32> to vector<8xf32>
    %16 = vector.shape_cast %15 : vector<8xf32> to vector<8x1xf32>
    %cst_11 = arith.constant 1.562500e-02 : f32
    %17 = vector.broadcast %cst_11 : f32 to vector<8x1xf32>
    %18 = arith.mulf %16, %17 : vector<8x1xf32>
    %19 = arith.mulf %13, %13 : vector<8x1xf32>
    %20 = arith.subf %18, %19 : vector<8x1xf32>
    %21 = vector.broadcast %13 : vector<8x1xf32> to vector<8x128xf32>
    %22 = arith.subf %9, %21 : vector<8x128xf32>
    %cst_12 = arith.constant 9.99999974E-6 : f32
    %23 = vector.broadcast %cst_12 : f32 to vector<8x1xf32>
    %24 = arith.addf %20, %23 : vector<8x1xf32>
    %25 = math.rsqrt %24 : vector<8x1xf32>
    %26 = vector.broadcast %25 : vector<8x1xf32> to vector<8x128xf32>
    %27 = arith.mulf %22, %26 : vector<8x128xf32>
    %28 = vector.broadcast %5 : vector<1x128xf32> to vector<8x128xf32>
    %29 = arith.mulf %27, %28 : vector<8x128xf32>
    %30 = vector.broadcast %6 : vector<1x128xf32> to vector<8x128xf32>
    %31 = arith.addf %29, %30 : vector<8x128xf32>
    %cst_13 = arith.constant 0.000000e+00 : f32
    %32 = vector.broadcast %cst_13 : f32 to vector<8x128xf32>
    %33 = arith.maximumf %31, %32 : vector<8x128xf32>
    %34 = arith.truncf %33 : vector<8x128xf32> to vector<8x128xbf16>
    %c0_14 = arith.constant 0 : index
    %c0_15 = arith.constant 0 : index
    %35 = vector.load %arg4[%c0_14, %c0_15] : memref<128x32xbf16, #tpu.memory_space<vmem>>, vector<128x32xbf16>
    %cst_16 = arith.constant dense<0.000000e+00> : vector<8x32xf32>
    %36 = tpu.matmul %34, %35, %cst_16 {dimension_numbers = #tpu.dot_dimension_numbers<[1], [0], [0], [1], [0, 0, 1, 1], [], []>} : vector<8x128xbf16>, vector<128x32xbf16>, vector<8x32xf32> -> vector<8x32xf32>
    %37 = vector.broadcast %7 : vector<1x32xf32> to vector<8x32xf32>
    %38 = arith.addf %36, %37 : vector<8x32xf32>
    %c0_17 = arith.constant 0 : index
    %c0_18 = arith.constant 0 : index
    %39 = vector.load %arg5[%c0_17, %c0_18] : memref<8x32xf32, #tpu.memory_space<vmem>>, vector<8x32xf32>
    tpu.vector_store %arg5[%c0_17, %c0_18], %38 {strides = array<i32>} : memref<8x32xf32, #tpu.memory_space<vmem>>, vector<8x32xf32>,
    return
  }
  func.func @transform_0(%arg0: i32) -> (i32, i32) {
    %c0_i32 = arith.constant 0 : i32
    %c0_i32_0 = arith.constant 0 : i32
    return %arg0, %c0_i32 : i32, i32
  }
  func.func @transform_1(%arg0: i32) -> (i32, i32) {
    %c0_i32 = arith.constant 0 : i32
    %c0_i32_0 = arith.constant 0 : i32
    %c0_i32_1 = arith.constant 0 : i32
    return %c0_i32, %c0_i32_0 : i32, i32
  }
  func.func @transform_2(%arg0: i32) -> (i32, i32) {
    %c0_i32 = arith.constant 0 : i32
    %c0_i32_0 = arith.constant 0 : i32
    %c0_i32_1 = arith.constant 0 : i32
    return %c0_i32, %c0_i32_0 : i32, i32
  }
  func.func @transform_3(%arg0: i32) -> (i32, i32) {
    %c0_i32 = arith.constant 0 : i32
    %c0_i32_0 = arith.constant 0 : i32
    %c0_i32_1 = arith.constant 0 : i32
    return %c0_i32, %c0_i32_0 : i32, i32
  }
  func.func @transform_4(%arg0: i32) -> (i32, i32) {
    %c0_i32 = arith.constant 0 : i32
    %c0_i32_0 = arith.constant 0 : i32
    return %arg0, %c0_i32 : i32, i32
  }
}

</mosaic_0001>

<bundles_post_ra>
// kernel: tpu_custom_call.1
= control target key start
LH: loop header
LB: loop body
LE: loop exit
PB: predicated region body
PF: predicated region fallthrough
CT: control target
= control target key end

     0   :  { %v331_v1 = vmov 0.0   ;;  %vm332_vm0 = vmmov 0   ;;  %vm45_vm1 = vcmask 261120   ;;  %s418_s0 = inlined_call_operand.vmem [shape: f32[8,32], index: 0, kind: input, shape index: {}]   ;;  %s419_s1 = inlined_call_operand.vmem [shape: bf16[32,128], index: 1, kind: input, shape index: {}]   ;;  %s420_s2 = inlined_call_operand.vmem [shape: f32[4,128], index: 2, kind: input, shape index: {}]   ;;  %s421_s3 = inlined_call_operand.vmem [shape: bf16[128,32], index: 3, kind: input, shape index: {}]   ;;  %s422_s4 = inlined_call_operand.hbm [shape: f32[8,32], index: 4, kind: output, shape index: {}]  }
   0x1   :  { %v295_v0 = vld [vmem:[%s419_s1] sm:$0xff]   ;;  %264 = vmatprep.subr.bf16.mxu0 %v331_v1  ;;  %272 = vmatprep.subr.bf16.mxu1 %v331_v1  ;;  %v296_v2 = vld [vmem:[%s419_s1 + $0x8] sm:$0xff]  }
   0x2   :  { %265 = vmatpush3.bf16.msra.mxu0 %v295_v0  ;;  %268 = vmatprep.mubr.msk.bf16.mxu0 %vm332_vm0, %v331_v1  ;;  %v19_v3 = vld [vmem:[%s418_s0] sm:$0xff] }
   0x3   :  { %266 = vmatprep.subr.bf16.mxu0 %v331_v1  ;;  %288 = vmatprep.mubr.msk.bf16.mxu1 %vm332_vm0, %v331_v1  ;;  %v20_v4 = vpack.c.bf16 %v19_v3, %v19_v3 }
   0x6   :  { %267 = vmatpush3.bf16.msra.mxu0 %v296_v2 }
   0x7   :  { %9 = vsyncpa [#allocation3], 0  ;;  %v237_v5 = vld [vmem:[%s420_s2] ss:$0 sm:$0xff]  ;;  %v298_v13 = vld [vmem:[%s421_s3 + $0x8] sm:$0xff]   ;;  %s333_s16 = smov [#allocation2]  }
   0x8   :  { %v297_v12 = vld [vmem:[%s421_s3] sm:$0xff]   ;;  %v299_v14 = vld [vmem:[%s421_s3 + $0x10] sm:$0xff]   ;;  %v300_v15 = vld [vmem:[%s421_s3 + $0x18] sm:$0xff]   ;;  %s229_s17 = sshll.u32 %s333_s16, 4  ;;  %s230_s17 = int_to_ptr.vmem [resolvable:$true] %s229_s17 }
   0x9   :  { %269 = vmatmul.mubr.msk.bf16.vlgmr.msra.gmra.mrb[0].mxu0 %vm45_vm1, %v20_v4  ;;  %273 = vmatpush3.bf16.msra.mxu1 %v297_v12  ;;  %v301_v16 = vld [vmem:[%s421_s3 + $0x20] sm:$0xff]   ;;  %v302_v17 = vld [vmem:[%s421_s3 + $0x28] sm:$0xff]   ;;  %v303_v18 = vld [vmem:[%s421_s3 + $0x30] sm:$0xff]   ;;  %s307_s18 = scalar_lea.vmem %s230_s17, 128  ;;  %p312_p1 = scmp.lt.s32.totalorder %s230_s17, %s230_s17 }
   0xa   :  { %274 = vmatprep.subr.bf16.mxu1 %v331_v1  ;;  %v304_v19 = vld [vmem:[%s421_s3 + $0x38] sm:$0xff]   ;;  %v241_v29 = vld [vmem:[%s420_s2 + $0x1] ss:$0 sm:$0xff]  ;;  %v242_v31 = vld [vmem:[%s420_s2 + $0x2] ss:$0 sm:$0xff]  ;;  %p308_p0 = scmp.ne.s32.totalorder %s230_s17, %s307_s18  ;;  %p313_p2 = scmp.lt.s32.totalorder %s307_s18, %s307_s18 }
   0xb   :  { %v243_v36 = vld [vmem:[%s420_s2 + $0x3] ss:$0 sm:$0xff] }
   0xc   :  { %p314_p3 = por %p313_p2, %p312_p1 }
   0xd   :  { %275 = vmatpush3.bf16.msra.mxu1 %v298_v13 }
   0xe   :  { %276 = vmatprep.subr.bf16.mxu1 %v331_v1  ;;  %p315_p4 = pnand %p314_p3, %p308_p0 }
  0x11   :  { %277 = vmatpush3.bf16.msra.mxu1 %v299_v14 }
  0x12   :  { %278 = vmatprep.subr.bf16.mxu1 %v331_v1 }
  0x15   :  { %279 = vmatpush3.bf16.msra.mxu1 %v300_v15 }
  0x16   :  { %280 = vmatprep.subr.bf16.mxu1 %v331_v1 }
  0x19   :  { %281 = vmatpush3.bf16.msra.mxu1 %v301_v16 }
  0x1a   :  { %282 = vmatprep.subr.bf16.mxu1 %v331_v1 }
  0x1d   :  { %283 = vmatpush3.bf16.msra.mxu1 %v302_v17 }
  0x1e   :  { %284 = vmatprep.subr.bf16.mxu1 %v331_v1 }
  0x21   :  { %285 = vmatpush3.bf16.msra.mxu1 %v303_v18 }
  0x22   :  { %286 = vmatprep.subr.bf16.mxu1 %v331_v1 }
  0x25   :  { %287 = vmatpush3.bf16.msra.mxu1 %v304_v19 }
  0xdc   :  { %v83_v6 = vpop.f32.mrb[0].mxu0 }
  0xdd   :  { %v84_v7 = vadd.f32 %v237_v5, %v83_v6  ;;  %v270_v8 = vpop.f32.mrb[1].mxu0 }
  0xde   :  { %v86_v9 = vpop.f32.mrb[2].mxu0 }
  0xdf   :  { %89 = vadd.xlane.f32.xlu0 %v84_v7  ;;  %v271_v10 = vpop.f32.mrb[3].mxu0  ;;  %v92_v11 = vmul.f32 %v84_v7, %v84_v7 }
  0xe3   :  { %93 = vadd.xlane.f32.xlu0 %v92_v11 }
 0x16c   :  { %v90_v20 = vpop.xlane.xlu0 %89 }
 0x16d   :  { %v91_v21 = vmul.f32 0.015625, %v90_v20 }
 0x16f   :  { %v96_v23 = vmul.f32 %v91_v21, %v91_v21  ;;  %v98_v27 = vsub.f32 %v84_v7, %v91_v21 }
 0x170   :  { %v94_v22 = vpop.xlane.xlu0 %93 }
 0x171   :  { %v95_v24 = vmul.f32 0.015625, %v94_v22 }
 0x173   :  { %v97_v25 = vsub.f32 %v95_v24, %v96_v23 }
 0x175   :  { %v99_v26 = vadd.f32 1e-05, %v97_v25 }
 0x177   :  { %305 = vrsqrt.f32 %v99_v26 }
 0x181   :  { %v306_v28 = vpop.eup %305 }
 0x182   :  { %v101_v30 = vmul.f32 %v306_v28, %v98_v27 }
 0x184   :  { %v106_v32 = vmul.f32 %v241_v29, %v101_v30 }
 0x186   :  { %v111_v33 = vadd.f32 %v242_v31, %v106_v32 }
 0x188   :  { %v112_v34 = vmax.f32 %v111_v33, 0.0 }
 0x18a   :  { %v113_v35 = vpack.c.bf16 %v112_v34, %v112_v34 }
 0x18c   :  { %289 = vmatmul.mubr.bf16.vlgmr.msra.gmra.mrb[0].mxu1 %v113_v35 }
 0x25f   :  { %v216_v37 = vpop.f32.mrb[0].mxu1 }
 0x260   :  { %v217_v38 = vadd.f32 %v243_v36, %v216_v37  ;;  %v290_v39 = vpop.f32.mrb[1].mxu1 }
 0x261   :  { %v219_v40 = vpop.f32.mrb[2].mxu1 }
 0x262   :  { %222 = vst.msk [vmem:[#allocation2] sm:$0xff] %vm45_vm1, %v217_v38  ;;  %v291_v41 = vpop.f32.mrb[3].mxu1 }
 0x263   :  { %318 = shalt.err (!%p315_p4)
}
 0x264   :  { %s319_s2 = scalar_lea.hbm %s422_s4, 128 }
 0x265   :  { %p320_p5 = scmp.ne.s32.totalorder %s422_s4, %s319_s2  ;;  %p323_p6 = scmp.lt.u32.totalorder %s319_s2, %s422_s4 }
 0x267   :  { %p325_p7 = pnand %p323_p6, %p320_p5 }
 0x269   :  { %328 = shalt.err (!%p325_p7)
}
 0x26a   :  { %232 = dma.vmem_to_hbm [thread:$0]  %s230_s17, 128, %s422_s4, [#allocation3]  }
 0x26b   :  { %329 = dma.done.wait [#allocation3], 128  }
 0x26c   :  { %330 = vsyncadd [#allocation3], 4294967168 }
 0x26d   :  { %236 = vsyncpa [#allocation3], 1 }

</bundles_post_ra>
